<compile_context>
chip_gen: v5e
topology: v5e:2x2
jax: 0.10.0
libtpu: 0.0.40
codegen_flags: <defaults>
</compile_context>

<pallas_src>
import math

import jax
import jax.numpy as jnp
from jax import lax
from jax.experimental import pallas as pl
from jax.experimental.pallas import tpu as pltpu

VMEM = pl.BlockSpec(memory_space=pltpu.MemorySpace.VMEM)


# ----------------------------- Pallas kernels ------------------------------ #

def _graphconv_relu_score_kernel(a_ref, x_ref, w_ref, b_ref, ws_ref, h_ref, s_ref):
    # GraphConv: out = lin_rel(sum_{j in N(i)} x_j) + lin_root(x_i), then ReLU.
    # Fused weight: concat([agg, x], -1) @ [w_rel; w_root] == agg@w_rel + x@w_root.
    x = x_ref[...]
    agg = jnp.dot(a_ref[...], x, preferred_element_type=jnp.float32)
    feats = jnp.concatenate([agg, x], axis=-1)                      # [N, 2*cin]
    h = jnp.dot(feats, w_ref[...], preferred_element_type=jnp.float32) + b_ref[...]
    h = jnp.maximum(h, 0.0)
    h_ref[...] = h
    # TopKPooling score: tanh(h . (w/||w||)).  ws_ref is the pre-normalized [1, H]
    # weight row; emit the score lane-dense as a [1, N] row (A @ B^T contraction).
    s = lax.dot_general(ws_ref[...], h,
                        dimension_numbers=(((1,), (1,)), ((), ())),
                        preferred_element_type=jnp.float32)         # [1, N]
    s_ref[...] = jnp.tanh(s)


def graphconv_relu_score(adj, x, w_fused, b, w_score_t):
    n = x.shape[0]
    h = w_fused.shape[1]
    return pl.pallas_call(
        _graphconv_relu_score_kernel,
        out_shape=(jax.ShapeDtypeStruct((n, h), jnp.float32),
                   jax.ShapeDtypeStruct((1, n), jnp.float32)),
        in_specs=[VMEM] * 5,
        out_specs=(VMEM, VMEM),
    )(adj, x, w_fused, b, w_score_t)


def _make_mlp_readout_kernel(num_layers, hidden):
    def kernel(*refs):
        xs_refs = refs[:num_layers]
        w1_ref, b1_ref, w2_ref, b2_ref, w3_ref, b3_ref, o_ref = refs[num_layers:]

        # Per-layer cat([gmp, gap]) readouts summed in-kernel.  Instead of a lane
        # concatenate, split lin1 into its max/mean halves:
        #   concat([M, A]) @ W1 == M @ W1[:H] + A @ W1[H:]
        x0 = xs_refs[0][...]                                        # [G, n0, H]
        sum_max = jnp.max(x0, axis=1)
        sum_mean = jnp.mean(x0, axis=1)
        for r in xs_refs[1:]:
            xi = r[...]
            sum_max = sum_max + jnp.max(xi, axis=1)
            sum_mean = sum_mean + jnp.mean(xi, axis=1)

        w1 = w1_ref[...]                                            # [2H, H]
        h1 = (jnp.dot(sum_max, w1[:hidden], preferred_element_type=jnp.float32)
              + jnp.dot(sum_mean, w1[hidden:], preferred_element_type=jnp.float32)
              + b1_ref[...])
        h1 = jnp.maximum(h1, 0.0)
        # F.dropout(p=0.5, training=False) is the identity in eval mode.
        h2 = jnp.maximum(
            jnp.dot(h1, w2_ref[...], preferred_element_type=jnp.float32) + b2_ref[...],
            0.0)
        o_ref[...] = jnp.dot(h2, w3_ref[...], preferred_element_type=jnp.float32) + b3_ref[...]
    return kernel


def mlp_readout_head(pooled_xs, w1, b1, w2, b2, w3, b3):
    g = pooled_xs[0].shape[0]
    out = w3.shape[1]
    hidden = w1.shape[0] // 2
    kernel = _make_mlp_readout_kernel(len(pooled_xs), hidden)
    return pl.pallas_call(
        kernel,
        out_shape=jax.ShapeDtypeStruct((g, out), jnp.float32),
        in_specs=[VMEM] * (len(pooled_xs) + 6),
        out_specs=VMEM,
    )(*pooled_xs, w1, b1, w2, b2, w3, b3)


# ------------------------------ JAX glue ----------------------------------- #

def knn_dense_adjacency(pos, batch, k):
    """Dense adjacency A[i, j] = 1 iff j is among the k nearest (same-graph) neighbors of i."""
    n = pos.shape[0]
    # Gram-matrix form of pairwise squared distances (MXU matmul, O(N^2) bytes).
    sq = jnp.sum(pos * pos, axis=-1)
    d = sq[:, None] + sq[None, :] - 2.0 * jnp.dot(pos, pos.T)
    valid = (batch[:, None] == batch[None, :]) & (~jnp.eye(n, dtype=bool))
    d = jnp.where(valid, d, jnp.inf)
    kk = max(1, min(k, n - 1))
    vals, idx = lax.top_k(-d, kk)
    keep = jnp.isfinite(vals).astype(jnp.float32)
    rows = jnp.broadcast_to(jnp.arange(n)[:, None], idx.shape)
    adj = jnp.zeros((n, n), dtype=jnp.float32)
    adj = adj.at[rows, idx].max(keep)
    return adj


def init_params(key, in_channels, hidden, out_channels, num_layers):
    layers = []
    for i in range(num_layers):
        cin = in_channels if i == 0 else hidden
        key, k1, k2, k3, k4 = jax.random.split(key, 5)
        w_rel = 0.1 * jax.random.normal(k1, (cin, hidden), jnp.float32)
        w_root = 0.1 * jax.random.normal(k2, (cin, hidden), jnp.float32)
        b_rel = 0.1 * jax.random.normal(k3, (1, hidden), jnp.float32)
        pool_w = jax.random.normal(k4, (hidden, 1), jnp.float32)
        # Derived, hoisted-out-of-kernel forms.
        w_fused = jnp.concatenate([w_rel, w_root], axis=0)           # [2*cin, hidden]
        pool_w_scaled_t = (pool_w / jnp.sqrt(jnp.sum(pool_w * pool_w))).reshape(1, hidden)
        layers.append(dict(
            w_fused=w_fused,
            b_rel=b_rel,
            pool_w_scaled_t=pool_w_scaled_t,
        ))
    key, k1, k2, k3, k4, k5, k6 = jax.random.split(key, 7)
    half = hidden // 2
    return dict(
        layers=layers,
        lin1_w=0.1 * jax.random.normal(k1, (2 * hidden, hidden), jnp.float32),
        lin1_b=0.1 * jax.random.normal(k2, (1, hidden), jnp.float32),
        lin2_w=0.1 * jax.random.normal(k3, (hidden, half), jnp.float32),
        lin2_b=0.1 * jax.random.normal(k4, (1, half), jnp.float32),
        lin3_w=0.1 * jax.random.normal(k5, (half, out_channels), jnp.float32),
        lin3_b=0.1 * jax.random.normal(k6, (1, out_channels), jnp.float32),
    )


def topk_classifier_forward(params, x, pos, adj, batch, n_per, num_graphs, pool_ratio):
    pooled_xs = []
    for i, layer in enumerate(params["layers"]):
        # GraphConv + ReLU + TopKPooling score, fused (Pallas).
        x, score_row = graphconv_relu_score(
            adj, x, layer["w_fused"], layer["b_rel"], layer["pool_w_scaled_t"])
        score = score_row[0]                               # [N]

        # TopKPooling: per-graph top-k selection + gather + gating (glue).
        k_keep = int(math.ceil(pool_ratio * n_per))
        score_g = score.reshape(num_graphs, n_per)
        _, idx = lax.top_k(score_g, k_keep)                # per-graph winners
        offsets = (jnp.arange(num_graphs) * n_per)[:, None]
        perm = (idx + offsets).reshape(-1)
        x = x[perm] * score[perm][:, None]                 # gate kept nodes by score
        pos = pos[perm]
        batch = batch[perm]
        n_per = k_keep

        # Readout inputs; gmp/gap + sum happen inside the MLP-head kernel.
        pooled_xs.append(x.reshape(num_graphs, n_per, -1))

        # TODO(synk): KnnEdges source unavailable; implemented as standard
        # knn_graph(pos[perm], k=start_k + i*k_increment) with start_k=6, k_increment=2.
        adj = knn_dense_adjacency(pos, batch, 6 + 2 * i)

    # sum of cat([gmp, gap]) readouts -> lin1 -> ReLU -> dropout(eval) -> lin2
    # -> ReLU -> lin3, all fused in one Pallas kernel.
    return mlp_readout_head(pooled_xs,
                            params["lin1_w"], params["lin1_b"],
                            params["lin2_w"], params["lin2_b"],
                            params["lin3_w"], params["lin3_b"])


# --------------------------------- main ------------------------------------ #

if __name__ == "__main__":
    in_channels = 4
    hidden_channels = 32
    out_channels = 4
    num_layers = 3
    pool_ratio = 0.5

    num_graphs = 2
    nodes_per_graph = 16
    n_total = num_graphs * nodes_per_graph

    key = jax.random.PRNGKey(0)
    key, kx, kp, kparams = jax.random.split(key, 4)
    x = jax.random.normal(kx, (n_total, in_channels), jnp.float32)
    pos = jax.random.uniform(kp, (n_total, 2), jnp.float32)
    batch = jnp.repeat(jnp.arange(num_graphs, dtype=jnp.int32), nodes_per_graph)

    params = init_params(kparams, in_channels, hidden_channels, out_channels, num_layers)

    # Initial edge_index of the synthetic "data" object: a kNN graph on pos.
    adj0 = knn_dense_adjacency(pos, batch, 6)

    fwd = jax.jit(topk_classifier_forward, static_argnums=(5, 6, 7))
    out = fwd(params, x, pos, adj0, batch, nodes_per_graph, num_graphs, pool_ratio)
    out = jax.block_until_ready(out)
    assert out.shape == (num_graphs, out_channels)
    assert bool(jnp.all(jnp.isfinite(out)))
    print("KERNEL_OK")
</pallas_src>

<mosaic_0001>
module attributes {stable_mosaic.version = 11 : i64} {
  func.func @_graphconv_relu_score_kernel(%arg0: memref<32x32xf32, #tpu.memory_space<vmem>>, %arg1: memref<32x4xf32, #tpu.memory_space<vmem>>, %arg2: memref<8x32xf32, #tpu.memory_space<vmem>>, %arg3: memref<1x32xf32, #tpu.memory_space<vmem>>, %arg4: memref<1x32xf32, #tpu.memory_space<vmem>>, %arg5: memref<32x32xf32, #tpu.memory_space<vmem>>, %arg6: memref<1x32xf32, #tpu.memory_space<vmem>>) attributes {dimension_semantics = [], scalar_prefetch = 0 : i64, scratch_operands = 0 : i64, tpu.core_type = #tpu.core_type<tc>} {
    %c0 = arith.constant 0 : index
    %c0_0 = arith.constant 0 : index
    %0 = vector.load %arg1[%c0, %c0_0] : memref<32x4xf32, #tpu.memory_space<vmem>>, vector<32x4xf32>
    %c0_1 = arith.constant 0 : index
    %c0_2 = arith.constant 0 : index
    %1 = vector.load %arg0[%c0_1, %c0_2] : memref<32x32xf32, #tpu.memory_space<vmem>>, vector<32x32xf32>
    %cst = arith.constant dense<0.000000e+00> : vector<32x4xf32>
    %2 = tpu.matmul %1, %0, %cst {dimension_numbers = #tpu.dot_dimension_numbers<[1], [0], [0], [1], [0, 0, 1, 1], [], []>} : vector<32x32xf32>, vector<32x4xf32>, vector<32x4xf32> -> vector<32x4xf32>
    %3 = tpu.concatenate %2, %0 in 1 : vector<32x4xf32>, vector<32x4xf32> -> vector<32x8xf32>
    %c0_3 = arith.constant 0 : index
    %c0_4 = arith.constant 0 : index
    %4 = vector.load %arg2[%c0_3, %c0_4] : memref<8x32xf32, #tpu.memory_space<vmem>>, vector<8x32xf32>
    %cst_5 = arith.constant dense<0.000000e+00> : vector<32x32xf32>
    %5 = tpu.matmul %3, %4, %cst_5 {dimension_numbers = #tpu.dot_dimension_numbers<[1], [0], [0], [1], [0, 0, 1, 1], [], []>} : vector<32x8xf32>, vector<8x32xf32>, vector<32x32xf32> -> vector<32x32xf32>
    %c0_6 = arith.constant 0 : index
    %c0_7 = arith.constant 0 : index
    %6 = vector.load %arg3[%c0_6, %c0_7] : memref<1x32xf32, #tpu.memory_space<vmem>>, vector<1x32xf32>
    %7 = vector.broadcast %6 : vector<1x32xf32> to vector<32x32xf32>
    %8 = arith.addf %5, %7 : vector<32x32xf32>
    %cst_8 = arith.constant 0.000000e+00 : f32
    %9 = vector.broadcast %cst_8 : f32 to vector<32x32xf32>
    %10 = arith.maximumf %8, %9 : vector<32x32xf32>
    %c0_9 = arith.constant 0 : index
    %c0_10 = arith.constant 0 : index
    %11 = vector.load %arg5[%c0_9, %c0_10] : memref<32x32xf32, #tpu.memory_space<vmem>>, vector<32x32xf32>
    tpu.vector_store %arg5[%c0_9, %c0_10], %10 {strides = array<i32>} : memref<32x32xf32, #tpu.memory_space<vmem>>, vector<32x32xf32>,
    %c0_11 = arith.constant 0 : index
    %c0_12 = arith.constant 0 : index
    %12 = vector.load %arg4[%c0_11, %c0_12] : memref<1x32xf32, #tpu.memory_space<vmem>>, vector<1x32xf32>
    %cst_13 = arith.constant dense<0.000000e+00> : vector<1x32xf32>
    %13 = tpu.matmul %12, %10, %cst_13 {dimension_numbers = #tpu.dot_dimension_numbers<[1], [1], [0], [0], [0, 0, 1, 0], [], []>} : vector<1x32xf32>, vector<32x32xf32>, vector<1x32xf32> -> vector<1x32xf32>
    %14 = math.tanh %13 : vector<1x32xf32>
    %c0_14 = arith.constant 0 : index
    %c0_15 = arith.constant 0 : index
    %15 = vector.load %arg6[%c0_14, %c0_15] : memref<1x32xf32, #tpu.memory_space<vmem>>, vector<1x32xf32>
    tpu.vector_store %arg6[%c0_14, %c0_15], %14 {strides = array<i32>} : memref<1x32xf32, #tpu.memory_space<vmem>>, vector<1x32xf32>,
    return
  }
}

module attributes {stable_mosaic.version = 11 : i64} {
  func.func @_graphconv_relu_score_kernel(%arg0: memref<16x16xf32, #tpu.memory_space<vmem>>, %arg1: memref<16x32xf32, #tpu.memory_space<vmem>>, %arg2: memref<64x32xf32, #tpu.memory_space<vmem>>, %arg3: memref<1x32xf32, #tpu.memory_space<vmem>>, %arg4: memref<1x32xf32, #tpu.memory_space<vmem>>, %arg5: memref<16x32xf32, #tpu.memory_space<vmem>>, %arg6: memref<1x16xf32, #tpu.memory_space<vmem>>) attributes {dimension_semantics = [], scalar_prefetch = 0 : i64, scratch_operands = 0 : i64, tpu.core_type = #tpu.core_type<tc>} {
    %c0 = arith.constant 0 : index
    %c0_0 = arith.constant 0 : index
    %0 = vector.load %arg1[%c0, %c0_0] : memref<16x32xf32, #tpu.memory_space<vmem>>, vector<16x32xf32>
    %c0_1 = arith.constant 0 : index
    %c0_2 = arith.constant 0 : index
    %1 = vector.load %arg0[%c0_1, %c0_2] : memref<16x16xf32, #tpu.memory_space<vmem>>, vector<16x16xf32>
    %cst = arith.constant dense<0.000000e+00> : vector<16x32xf32>
    %2 = tpu.matmul %1, %0, %cst {dimension_numbers = #tpu.dot_dimension_numbers<[1], [0], [0], [1], [0, 0, 1, 1], [], []>} : vector<16x16xf32>, vector<16x32xf32>, vector<16x32xf32> -> vector<16x32xf32>
    %3 = tpu.concatenate %2, %0 in 1 : vector<16x32xf32>, vector<16x32xf32> -> vector<16x64xf32>
    %c0_3 = arith.constant 0 : index
    %c0_4 = arith.constant 0 : index
    %4 = vector.load %arg2[%c0_3, %c0_4] : memref<64x32xf32, #tpu.memory_space<vmem>>, vector<64x32xf32>
    %cst_5 = arith.constant dense<0.000000e+00> : vector<16x32xf32>
    %5 = tpu.matmul %3, %4, %cst_5 {dimension_numbers = #tpu.dot_dimension_numbers<[1], [0], [0], [1], [0, 0, 1, 1], [], []>} : vector<16x64xf32>, vector<64x32xf32>, vector<16x32xf32> -> vector<16x32xf32>
    %c0_6 = arith.constant 0 : index
    %c0_7 = arith.constant 0 : index
    %6 = vector.load %arg3[%c0_6, %c0_7] : memref<1x32xf32, #tpu.memory_space<vmem>>, vector<1x32xf32>
    %7 = vector.broadcast %6 : vector<1x32xf32> to vector<16x32xf32>
    %8 = arith.addf %5, %7 : vector<16x32xf32>
    %cst_8 = arith.constant 0.000000e+00 : f32
    %9 = vector.broadcast %cst_8 : f32 to vector<16x32xf32>
    %10 = arith.maximumf %8, %9 : vector<16x32xf32>
    %c0_9 = arith.constant 0 : index
    %c0_10 = arith.constant 0 : index
    %11 = vector.load %arg5[%c0_9, %c0_10] : memref<16x32xf32, #tpu.memory_space<vmem>>, vector<16x32xf32>
    tpu.vector_store %arg5[%c0_9, %c0_10], %10 {strides = array<i32>} : memref<16x32xf32, #tpu.memory_space<vmem>>, vector<16x32xf32>,
    %c0_11 = arith.constant 0 : index
    %c0_12 = arith.constant 0 : index
    %12 = vector.load %arg4[%c0_11, %c0_12] : memref<1x32xf32, #tpu.memory_space<vmem>>, vector<1x32xf32>
    %cst_13 = arith.constant dense<0.000000e+00> : vector<1x16xf32>
    %13 = tpu.matmul %12, %10, %cst_13 {dimension_numbers = #tpu.dot_dimension_numbers<[1], [1], [0], [0], [0, 0, 1, 0], [], []>} : vector<1x32xf32>, vector<16x32xf32>, vector<1x16xf32> -> vector<1x16xf32>
    %14 = math.tanh %13 : vector<1x16xf32>
    %c0_14 = arith.constant 0 : index
    %c0_15 = arith.constant 0 : index
    %15 = vector.load %arg6[%c0_14, %c0_15] : memref<1x16xf32, #tpu.memory_space<vmem>>, vector<1x16xf32>
    tpu.vector_store %arg6[%c0_14, %c0_15], %14 {strides = array<i32>} : memref<1x16xf32, #tpu.memory_space<vmem>>, vector<1x16xf32>,
    return
  }
}

module attributes {stable_mosaic.version = 11 : i64} {
  func.func @_graphconv_relu_score_kernel(%arg0: memref<8x8xf32, #tpu.memory_space<vmem>>, %arg1: memref<8x32xf32, #tpu.memory_space<vmem>>, %arg2: memref<64x32xf32, #tpu.memory_space<vmem>>, %arg3: memref<1x32xf32, #tpu.memory_space<vmem>>, %arg4: memref<1x32xf32, #tpu.memory_space<vmem>>, %arg5: memref<8x32xf32, #tpu.memory_space<vmem>>, %arg6: memref<1x8xf32, #tpu.memory_space<vmem>>) attributes {dimension_semantics = [], scalar_prefetch = 0 : i64, scratch_operands = 0 : i64, tpu.core_type = #tpu.core_type<tc>} {
    %c0 = arith.constant 0 : index
    %c0_0 = arith.constant 0 : index
    %0 = vector.load %arg1[%c0, %c0_0] : memref<8x32xf32, #tpu.memory_space<vmem>>, vector<8x32xf32>
    %c0_1 = arith.constant 0 : index
    %c0_2 = arith.constant 0 : index
    %1 = vector.load %arg0[%c0_1, %c0_2] : memref<8x8xf32, #tpu.memory_space<vmem>>, vector<8x8xf32>
    %cst = arith.constant dense<0.000000e+00> : vector<8x32xf32>
    %2 = tpu.matmul %1, %0, %cst {dimension_numbers = #tpu.dot_dimension_numbers<[1], [0], [0], [1], [0, 0, 1, 1], [], []>} : vector<8x8xf32>, vector<8x32xf32>, vector<8x32xf32> -> vector<8x32xf32>
    %3 = tpu.concatenate %2, %0 in 1 : vector<8x32xf32>, vector<8x32xf32> -> vector<8x64xf32>
    %c0_3 = arith.constant 0 : index
    %c0_4 = arith.constant 0 : index
    %4 = vector.load %arg2[%c0_3, %c0_4] : memref<64x32xf32, #tpu.memory_space<vmem>>, vector<64x32xf32>
    %cst_5 = arith.constant dense<0.000000e+00> : vector<8x32xf32>
    %5 = tpu.matmul %3, %4, %cst_5 {dimension_numbers = #tpu.dot_dimension_numbers<[1], [0], [0], [1], [0, 0, 1, 1], [], []>} : vector<8x64xf32>, vector<64x32xf32>, vector<8x32xf32> -> vector<8x32xf32>
    %c0_6 = arith.constant 0 : index
    %c0_7 = arith.constant 0 : index
    %6 = vector.load %arg3[%c0_6, %c0_7] : memref<1x32xf32, #tpu.memory_space<vmem>>, vector<1x32xf32>
    %7 = vector.broadcast %6 : vector<1x32xf32> to vector<8x32xf32>
    %8 = arith.addf %5, %7 : vector<8x32xf32>
    %cst_8 = arith.constant 0.000000e+00 : f32
    %9 = vector.broadcast %cst_8 : f32 to vector<8x32xf32>
    %10 = arith.maximumf %8, %9 : vector<8x32xf32>
    %c0_9 = arith.constant 0 : index
    %c0_10 = arith.constant 0 : index
    %11 = vector.load %arg5[%c0_9, %c0_10] : memref<8x32xf32, #tpu.memory_space<vmem>>, vector<8x32xf32>
    tpu.vector_store %arg5[%c0_9, %c0_10], %10 {strides = array<i32>} : memref<8x32xf32, #tpu.memory_space<vmem>>, vector<8x32xf32>,
    %c0_11 = arith.constant 0 : index
    %c0_12 = arith.constant 0 : index
    %12 = vector.load %arg4[%c0_11, %c0_12] : memref<1x32xf32, #tpu.memory_space<vmem>>, vector<1x32xf32>
    %cst_13 = arith.constant dense<0.000000e+00> : vector<1x8xf32>
    %13 = tpu.matmul %12, %10, %cst_13 {dimension_numbers = #tpu.dot_dimension_numbers<[1], [1], [0], [0], [0, 0, 1, 0], [], []>} : vector<1x32xf32>, vector<8x32xf32>, vector<1x8xf32> -> vector<1x8xf32>
    %14 = math.tanh %13 : vector<1x8xf32>
    %c0_14 = arith.constant 0 : index
    %c0_15 = arith.constant 0 : index
    %15 = vector.load %arg6[%c0_14, %c0_15] : memref<1x8xf32, #tpu.memory_space<vmem>>, vector<1x8xf32>
    tpu.vector_store %arg6[%c0_14, %c0_15], %14 {strides = array<i32>} : memref<1x8xf32, #tpu.memory_space<vmem>>, vector<1x8xf32>,
    return
  }
}

module attributes {stable_mosaic.version = 11 : i64} {
  func.func @kernel(%arg0: memref<2x8x32xf32, #tpu.memory_space<vmem>>, %arg1: memref<2x4x32xf32, #tpu.memory_space<vmem>>, %arg2: memref<2x2x32xf32, #tpu.memory_space<vmem>>, %arg3: memref<64x32xf32, #tpu.memory_space<vmem>>, %arg4: memref<1x32xf32, #tpu.memory_space<vmem>>, %arg5: memref<32x16xf32, #tpu.memory_space<vmem>>, %arg6: memref<1x16xf32, #tpu.memory_space<vmem>>, %arg7: memref<16x4xf32, #tpu.memory_space<vmem>>, %arg8: memref<1x4xf32, #tpu.memory_space<vmem>>, %arg9: memref<2x4xf32, #tpu.memory_space<vmem>>) attributes {dimension_semantics = [], scalar_prefetch = 0 : i64, scratch_operands = 0 : i64, tpu.core_type = #tpu.core_type<tc>} {
    %c0 = arith.constant 0 : index
    %c0_0 = arith.constant 0 : index
    %c0_1 = arith.constant 0 : index
    %0 = vector.load %arg0[%c0, %c0_0, %c0_1] : memref<2x8x32xf32, #tpu.memory_space<vmem>>, vector<2x8x32xf32>
    %cst = arith.constant dense<0xFF800000> : vector<2x32xf32>
    %1 = vector.multi_reduction <maximumf>, %0, %cst [1] : vector<2x8x32xf32> to vector<2x32xf32>
    %cst_2 = arith.constant dense<0.000000e+00> : vector<2x32xf32>
    %2 = vector.multi_reduction <add>, %0, %cst_2 [1] : vector<2x8x32xf32> to vector<2x32xf32>
    %cst_3 = arith.constant 8.000000e+00 : f32
    %3 = vector.broadcast %cst_3 : f32 to vector<2x32xf32>
    %4 = arith.divf %2, %3 : vector<2x32xf32>
    %c0_4 = arith.constant 0 : index
    %c0_5 = arith.constant 0 : index
    %c0_6 = arith.constant 0 : index
    %5 = vector.load %arg1[%c0_4, %c0_5, %c0_6] : memref<2x4x32xf32, #tpu.memory_space<vmem>>, vector<2x4x32xf32>
    %cst_7 = arith.constant dense<0xFF800000> : vector<2x32xf32>
    %6 = vector.multi_reduction <maximumf>, %5, %cst_7 [1] : vector<2x4x32xf32> to vector<2x32xf32>
    %7 = arith.addf %1, %6 : vector<2x32xf32>
    %cst_8 = arith.constant dense<0.000000e+00> : vector<2x32xf32>
    %8 = vector.multi_reduction <add>, %5, %cst_8 [1] : vector<2x4x32xf32> to vector<2x32xf32>
    %cst_9 = arith.constant 4.000000e+00 : f32
    %9 = vector.broadcast %cst_9 : f32 to vector<2x32xf32>
    %10 = arith.divf %8, %9 : vector<2x32xf32>
    %11 = arith.addf %4, %10 : vector<2x32xf32>
    %c0_10 = arith.constant 0 : index
    %c0_11 = arith.constant 0 : index
    %c0_12 = arith.constant 0 : index
    %12 = vector.load %arg2[%c0_10, %c0_11, %c0_12] : memref<2x2x32xf32, #tpu.memory_space<vmem>>, vector<2x2x32xf32>
    %cst_13 = arith.constant dense<0xFF800000> : vector<2x32xf32>
    %13 = vector.multi_reduction <maximumf>, %12, %cst_13 [1] : vector<2x2x32xf32> to vector<2x32xf32>
    %14 = arith.addf %7, %13 : vector<2x32xf32>
    %cst_14 = arith.constant dense<0.000000e+00> : vector<2x32xf32>
    %15 = vector.multi_reduction <add>, %12, %cst_14 [1] : vector<2x2x32xf32> to vector<2x32xf32>
    %cst_15 = arith.constant 2.000000e+00 : f32
    %16 = vector.broadcast %cst_15 : f32 to vector<2x32xf32>
    %17 = arith.divf %15, %16 : vector<2x32xf32>
    %18 = arith.addf %11, %17 : vector<2x32xf32>
    %c0_16 = arith.constant 0 : index
    %c0_17 = arith.constant 0 : index
    %19 = vector.load %arg3[%c0_16, %c0_17] : memref<64x32xf32, #tpu.memory_space<vmem>>, vector<64x32xf32>
    %20 = vector.extract_strided_slice %19 {offsets = [0, 0], sizes = [32, 32], strides = [1, 1]} : vector<64x32xf32> to vector<32x32xf32>
    %cst_18 = arith.constant dense<0.000000e+00> : vector<2x32xf32>
    %21 = tpu.matmul %14, %20, %cst_18 {dimension_numbers = #tpu.dot_dimension_numbers<[1], [0], [0], [1], [0, 0, 1, 1], [], []>} : vector<2x32xf32>, vector<32x32xf32>, vector<2x32xf32> -> vector<2x32xf32>
    %22 = vector.extract_strided_slice %19 {offsets = [32, 0], sizes = [32, 32], strides = [1, 1]} : vector<64x32xf32> to vector<32x32xf32>
    %cst_19 = arith.constant dense<0.000000e+00> : vector<2x32xf32>
    %23 = tpu.matmul %18, %22, %cst_19 {dimension_numbers = #tpu.dot_dimension_numbers<[1], [0], [0], [1], [0, 0, 1, 1], [], []>} : vector<2x32xf32>, vector<32x32xf32>, vector<2x32xf32> -> vector<2x32xf32>
    %24 = arith.addf %21, %23 : vector<2x32xf32>
    %c0_20 = arith.constant 0 : index
    %c0_21 = arith.constant 0 : index
    %25 = vector.load %arg4[%c0_20, %c0_21] : memref<1x32xf32, #tpu.memory_space<vmem>>, vector<1x32xf32>
    %26 = vector.broadcast %25 : vector<1x32xf32> to vector<2x32xf32>
    %27 = arith.addf %24, %26 : vector<2x32xf32>
    %cst_22 = arith.constant 0.000000e+00 : f32
    %28 = vector.broadcast %cst_22 : f32 to vector<2x32xf32>
    %29 = arith.maximumf %27, %28 : vector<2x32xf32>
    %c0_23 = arith.constant 0 : index
    %c0_24 = arith.constant 0 : index
    %30 = vector.load %arg5[%c0_23, %c0_24] : memref<32x16xf32, #tpu.memory_space<vmem>>, vector<32x16xf32>
    %cst_25 = arith.constant dense<0.000000e+00> : vector<2x16xf32>
    %31 = tpu.matmul %29, %30, %cst_25 {dimension_numbers = #tpu.dot_dimension_numbers<[1], [0], [0], [1], [0, 0, 1, 1], [], []>} : vector<2x32xf32>, vector<32x16xf32>, vector<2x16xf32> -> vector<2x16xf32>
    %c0_26 = arith.constant 0 : index
    %c0_27 = arith.constant 0 : index
    %32 = vector.load %arg6[%c0_26, %c0_27] : memref<1x16xf32, #tpu.memory_space<vmem>>, vector<1x16xf32>
    %33 = vector.broadcast %32 : vector<1x16xf32> to vector<2x16xf32>
    %34 = arith.addf %31, %33 : vector<2x16xf32>
    %cst_28 = arith.constant 0.000000e+00 : f32
    %35 = vector.broadcast %cst_28 : f32 to vector<2x16xf32>
    %36 = arith.maximumf %34, %35 : vector<2x16xf32>
    %c0_29 = arith.constant 0 : index
    %c0_30 = arith.constant 0 : index
    %37 = vector.load %arg7[%c0_29, %c0_30] : memref<16x4xf32, #tpu.memory_space<vmem>>, vector<16x4xf32>
    %cst_31 = arith.constant dense<0.000000e+00> : vector<2x4xf32>
    %38 = tpu.matmul %36, %37, %cst_31 {dimension_numbers = #tpu.dot_dimension_numbers<[1], [0], [0], [1], [0, 0, 1, 1], [], []>} : vector<2x16xf32>, vector<16x4xf32>, vector<2x4xf32> -> vector<2x4xf32>
    %c0_32 = arith.constant 0 : index
    %c0_33 = arith.constant 0 : index
    %39 = vector.load %arg8[%c0_32, %c0_33] : memref<1x4xf32, #tpu.memory_space<vmem>>, vector<1x4xf32>
    %40 = vector.broadcast %39 : vector<1x4xf32> to vector<2x4xf32>
    %41 = arith.addf %38, %40 : vector<2x4xf32>
    %c0_34 = arith.constant 0 : index
    %c0_35 = arith.constant 0 : index
    %42 = vector.load %arg9[%c0_34, %c0_35] : memref<2x4xf32, #tpu.memory_space<vmem>>, vector<2x4xf32>
    tpu.vector_store %arg9[%c0_34, %c0_35], %41 {strides = array<i32>} : memref<2x4xf32, #tpu.memory_space<vmem>>, vector<2x4xf32>,
    return
  }
}

</mosaic_0001>

<bundles_post_ra>
// kernel: squeeze.7
= control target key start
LH: loop header
LB: loop body
LE: loop exit
PB: predicated region body
PF: predicated region fallthrough
CT: control target
= control target key end

     0   :  { %vm7_vm0 = vcmask 130048   ;;  %s39_s0 = inlined_call_operand.vmem [shape: f32[32], index: 0, kind: input, shape index: {}]   ;;  %s40_s1 = inlined_call_operand.vmem [shape: f32[2,16], index: 1, kind: output, shape index: {}]  }
   0x1   :  { %v4_v0 = vld [vmem:[%s39_s0] sm:$0x1]  ;;  %s22_s0 = smov 112  }
   0x2   :  { %5 = vst [vmem:[#allocation1] sm:$0x1] %v4_v0 }
   0x9   :  { %v9_v1 = vld [vmem:[#allocation1] sm:$0x1]  }
   0xa   :  { %v6_v2 = vld [vmem:[#allocation1] sm:$0x1]   ;;  %10 = vrot.lane.b32.xlu0 %v9_v1, %s22_s0 }
   0xb   :  { %8 = vst.msk [vmem:[#allocation0] sm:$0x1] %vm7_vm0, %v6_v2  }
  0x7c   :  { %v11_v3 = vpop.permute.xlu0 %10  }
  0x7d   :  { %14 = vst.msk [vmem:[#allocation0 + $0x1] sm:$0x1] %vm7_vm0, %v11_v3  }
  0x84   :  { %v17_v4 = vld [vmem:[#allocation0] sm:$0x3] }
  0x85   :  { %20 = vst [vmem:[%s40_s1] sm:$0x3] %v17_v4 }

// kernel: topk_classifier_forward.4
= control target key start
LH: loop header
LB: loop body
LE: loop exit
PB: predicated region body
PF: predicated region fallthrough
CT: control target
= control target key end

     0   :  { %s217_s27 = smov 4   ;;  %vm30_vm0 = vcmask 261120   ;;  %vm88_vm1 = vcmask 31744   ;;  %vm98_vm2 = vcmask 64512   ;;  %vm185_vm3 = vcmask 253952   ;;  %s314_s1 = inlined_call_operand.vmem [shape: f32[32,4], index: 1, kind: input, shape index: {}]   ;;  %s315_s0 = inlined_call_operand.vmem [shape: f32[32,32], index: 0, kind: input, shape index: {}]   ;;  %s316_s3 = inlined_call_operand.vmem [shape: f32[1,32], index: 3, kind: input, shape index: {}]   ;;  %s317_s2 = inlined_call_operand.vmem [shape: f32[8,32], index: 2, kind: input, shape index: {}]   ;;  %s318_s5 = inlined_call_operand.vmem [shape: f32[32,32], index: 5, kind: output, shape index: {0}]   ;;  %s319_s4 = inlined_call_operand.vmem [shape: f32[1,32], index: 4, kind: input, shape index: {}]   ;;  %s320_s6 = inlined_call_operand.vmem [shape: f32[1,32], index: 6, kind: output, shape index: {1}]  }
   0x1   :  { %v25_v0 = vld [vmem:[%s314_s1 + $0x18] sm:$0xff]  ;;  %v24_v1 = vld [vmem:[%s314_s1 + $0x10] sm:$0xff]  ;;  %v23_v2 = vld [vmem:[%s314_s1 + $0x8] sm:$0xff] }
   0x2   :  { %208 = vmatpush.msra.mxu3 %v25_v0  ;;  %78 = vrot.lane.b32.xlu0 %v23_v2, %s217_s27  ;;  %v22_v3 = vld [vmem:[%s314_s1] sm:$0xff]  ;;  %v27_v4 = vld [vmem:[%s315_s0 + $0x8] sm:$0xff]  ;;  %v28_v6 = vld [vmem:[%s315_s0 + $0x10] sm:$0xff] }
   0x3   :  { %55 = vmatpush.msra.mxu0 %v25_v0  ;;  %82 = vrot.lane.b32.xlu1 %v25_v0, %s217_s27  ;;  %v26_v5 = vld [vmem:[%s315_s0] sm:$0xff]  ;;  %v29_v7 = vld [vmem:[%s315_s0 + $0x18] sm:$0xff] }
   0x4   :  { %209 = vmatpush.msra.mxu3 %v24_v1  ;;  %v93_v8 = vld [vmem:[%s317_s2] sm:$0xff] }
   0x5   :  { %56 = vmatpush.msra.mxu0 %v24_v1  ;;  %212 = vmatpush.msra.mxu1 %v93_v8  ;;  %v214_v21 = vld [vmem:[%s316_s3] ss:$0 sm:$0xff] }
   0x6   :  { %210 = vmatpush.msra.mxu3 %v23_v2  ;;  %v148_v34 = vld [vmem:[%s319_s4] sm:$0x1] }
   0x7   :  { %57 = vmatpush.msra.mxu0 %v23_v2 }
   0x8   :  { %211 = vmatpush.msra.mxu3 %v22_v3 }
   0x9   :  { %196 = vmatmul.msk.f32.vlgmr.msra.gmra.mxu3 %vm30_vm0, %v27_v4  ;;  %58 = vmatpush.msra.mxu0 %v22_v3 }
   0xa   :  { %80 = vrot.lane.b32.xlu0 %v24_v1, %s217_s27  ;;  %195 = vmatmul.msk.f32.vlgmr.msra.gmra.mxu0 %vm30_vm0, %v26_v5 }
   0xb   :  { %76 = vrot.lane.b32.xlu1 %v22_v3, %s217_s27  ;;  %126 = vmatpush.msrb.mxu0 %v93_v8 }
  0x11   :  { %197 = vmatmul.msk.f32.gmra.mxu3 %vm30_vm0, %v28_v6 }
  0x19   :  { %198 = vmatmul.msk.f32.gmra.mxu3 %vm30_vm0, %v29_v7 }
  0x74   :  { %v79_v12 = vpop.permute.xlu0 %78 }
  0x75   :  { %v83_v9 = vpop.permute.xlu1 %82 }
  0x7c   :  { %v81_v16 = vpop.permute.xlu0 %80 }
  0x7d   :  { %v77_v10 = vpop.permute.xlu1 %76 }
  0x87   :  { %v60_v11 = vpop.f32.mrf.mxu0 }
  0x88   :  { %v89_v13 = vsel %vm88_vm1, %v60_v11, %v77_v10 }
  0x89   :  { %199 = vmatmul.msk.f32.vlgmr.msrb.gmra.mxu0 %vm98_vm2, %v89_v13 }
  0x8c   :  { %v63_v14 = vpop.f32.mrf.mxu3 }
  0x8d   :  { %v90_v15 = vsel %vm88_vm1, %v63_v14, %v79_v12 }
  0x8e   :  { %200 = vmatmul.msk.f32.vlgmr.msra.gmra.mxu1 %vm98_vm2, %v90_v15 }
  0x94   :  { %v66_v17 = vpop.f32.mrf.mxu3 }
  0x95   :  { %v91_v18 = vsel %vm88_vm1, %v66_v17, %v81_v16 }
  0x96   :  { %201 = vmatmul.msk.f32.gmra.mxu1 %vm98_vm2, %v91_v18 }
  0x9c   :  { %v69_v19 = vpop.f32.mrf.mxu3 }
  0x9d   :  { %v92_v20 = vsel %vm88_vm1, %v69_v19, %v83_v9 }
  0x9e   :  { %202 = vmatmul.msk.f32.gmra.mxu1 %vm98_vm2, %v92_v20 }
 0x106   :  { %v128_v22 = vpop.f32.mrf.mxu0 }
 0x107   :  { %v129_v23 = vadd.f32 %v214_v21, %v128_v22 }
 0x109   :  { %v140_v24 = vmax.f32 %v129_v23, 0.0 }
 0x10b   :  { %v131_v25 = vpop.f32.mrf.mxu1  ;;  %144 = vst.msk [vmem:[%s318_s5] sm:$0xff] %vm30_vm0, %v140_v24 }
 0x10c   :  { %v132_v26 = vadd.f32 %v214_v21, %v131_v25 }
 0x10e   :  { %v141_v27 = vmax.f32 %v132_v26, 0.0 }
 0x110   :  { %145 = vst.msk [vmem:[%s318_s5 + $0x8] sm:$0xff] %vm30_vm0, %v141_v27 }
 0x113   :  { %v134_v28 = vpop.f32.mrf.mxu1 }
 0x114   :  { %v135_v29 = vadd.f32 %v214_v21, %v134_v28 }
 0x116   :  { %v142_v30 = vmax.f32 %v135_v29, 0.0 }
 0x118   :  { %146 = vst.msk [vmem:[%s318_s5 + $0x10] sm:$0xff] %vm30_vm0, %v142_v30 }
 0x11b   :  { %v137_v31 = vpop.f32.mrf.mxu1 }
 0x11c   :  { %v138_v32 = vadd.f32 %v214_v21, %v137_v31 }
 0x11e   :  { %v143_v33 = vmax.f32 %v138_v32, 0.0 }
 0x120   :  { %147 = vst.msk [vmem:[%s318_s5 + $0x18] sm:$0xff] %vm30_vm0, %v143_v33  ;;  %203 = vmatpush.xpose.msk.msra.mxu2 %vm30_vm0, %v143_v33 }
 0x124   :  { %204 = vmatpush.xpose.msk.msra.mxu2 %vm30_vm0, %v142_v30 }
 0x128   :  { %205 = vmatpush.xpose.msk.msra.mxu2 %vm30_vm0, %v141_v27 }
 0x12c   :  { %206 = vmatpush.xpose.msk.msra.mxu2 %vm30_vm0, %v140_v24 }
 0x12f   :  { %207 = vmatmul.msk.f32.vlgmr.msra.gmra.mxu2 %vm30_vm0, %v148_v34 }
 0x1b2   :  { %v181_v35 = vpop.f32.mrf.mxu2 }
 0x1b3   :  { %215 = vtanh.f32 %v181_v35 }
 0x1b9   :  { %v216_v36 = vpop.eup %215 }
 0x1ba   :  { %186 = vst.msk [vmem:[%s320_s6] sm:$0x1] %vm185_vm3, %v216_v36 }

// kernel: topk_classifier_forward.5
= control target key start
LH: loop header
LB: loop body
LE: loop exit
PB: predicated region body
PF: predicated region fallthrough
CT: control target
= control target key end

     0   :  { %vm26_vm0 = vcmask 130048   ;;  %s173_s27 = smov 32   ;;  %vm64_vm1 = vcmask 261120   ;;  %vm79_vm2 = vcmask 523264   ;;  %vm144_vm3 = vcmask 122880   ;;  %s269_s1 = inlined_call_operand.vmem [shape: f32[16,32], index: 1, kind: input, shape index: {}]   ;;  %s270_s0 = inlined_call_operand.vmem [shape: f32[16,16], index: 0, kind: input, shape index: {}]   ;;  %s271_s2 = inlined_call_operand.vmem [shape: f32[64,32], index: 2, kind: input, shape index: {}]   ;;  %s272_s3 = inlined_call_operand.vmem [shape: f32[1,32], index: 3, kind: input, shape index: {}]   ;;  %s273_s5 = inlined_call_operand.vmem [shape: f32[16,32], index: 5, kind: output, shape index: {0}]   ;;  %s274_s4 = inlined_call_operand.vmem [shape: f32[1,32], index: 4, kind: input, shape index: {}]   ;;  %s275_s6 = inlined_call_operand.vmem [shape: f32[1,16], index: 6, kind: output, shape index: {1}]  }
   0x1   :  { %v23_v0 = vld [vmem:[%s269_s1 + $0x8] sm:$0xff]  ;;  %v22_v1 = vld [vmem:[%s269_s1] sm:$0xff]  ;;  %v74_v3 = vld [vmem:[%s271_s2 + $0x38] sm:$0xff] }
   0x2   :  { %47 = vmatpush.msra.mxu0 %v23_v0  ;;  %v24_v2 = vld [vmem:[%s270_s0] sm:$0xff]  ;;  %60 = vrot.lane.b32.xlu0 %v23_v0, %s173_s27  ;;  %v73_v4 = vld [vmem:[%s271_s2 + $0x30] sm:$0xff]  ;;  %v72_v5 = vld [vmem:[%s271_s2 + $0x28] sm:$0xff] }
   0x3   :  { %94 = vmatpush.msra.mxu1 %v74_v3  ;;  %161 = vmatpush.msra.mxu3 %v74_v3  ;;  %v25_v6 = vld [vmem:[%s270_s0 + $0x8] sm:$0xff]  ;;  %v71_v7 = vld [vmem:[%s271_s2 + $0x20] sm:$0xff]  ;;  %v70_v8 = vld [vmem:[%s271_s2 + $0x18] sm:$0xff] }
   0x4   :  { %48 = vmatpush.msra.mxu0 %v22_v1  ;;  %v69_v9 = vld [vmem:[%s271_s2 + $0x10] sm:$0xff]  ;;  %v68_v10 = vld [vmem:[%s271_s2 + $0x8] sm:$0xff]  ;;  %v67_v11 = vld [vmem:[%s271_s2] sm:$0xff] }
   0x5   :  { %154 = vmatmul.msk.f32.vlgmr.msra.gmra.mxu0 %vm26_vm0, %v24_v2  ;;  %95 = vmatpush.msra.mxu1 %v73_v4  ;;  %v170_v18 = vld [vmem:[%s272_s3] ss:$0 sm:$0xff] }
   0x6   :  { %162 = vmatpush.msra.mxu3 %v73_v4  ;;  %v113_v25 = vld [vmem:[%s274_s4] sm:$0x1] }
   0x7   :  { %96 = vmatpush.msra.mxu1 %v72_v5 }
   0x8   :  { %163 = vmatpush.msra.mxu3 %v72_v5 }
   0x9   :  { %97 = vmatpush.msra.mxu1 %v71_v7 }
   0xa   :  { %58 = vrot.lane.b32.xlu0 %v22_v1, %s173_s27  ;;  %164 = vmatpush.msra.mxu3 %v71_v7 }
   0xb   :  { %98 = vmatpush.msra.mxu1 %v70_v8 }
   0xc   :  { %165 = vmatpush.msra.mxu3 %v70_v8 }
   0xd   :  { %155 = vmatmul.msk.f32.gmra.mxu0 %vm26_vm0, %v25_v6  ;;  %99 = vmatpush.msra.mxu1 %v69_v9 }
   0xe   :  { %166 = vmatpush.msra.mxu3 %v69_v9 }
   0xf   :  { %100 = vmatpush.msra.mxu1 %v68_v10 }
  0x10   :  { %167 = vmatpush.msra.mxu3 %v68_v10 }
  0x11   :  { %101 = vmatpush.msra.mxu1 %v67_v11 }
  0x12   :  { %168 = vmatpush.msra.mxu3 %v67_v11 }
  0x74   :  { %v61_v12 = vpop.permute.xlu0 %60 }
  0x7c   :  { %v59_v13 = vpop.permute.xlu0 %58 }
  0x82   :  { %v50_v14 = vpop.f32.mrf.mxu0 }
  0x83   :  { %v65_v15 = vsel %vm64_vm1, %v50_v14, %v59_v13 }
  0x84   :  { %156 = vmatmul.msk.f32.vlgmr.msra.gmra.mxu1 %vm79_vm2, %v65_v15 }
  0x8a   :  { %v53_v16 = vpop.f32.mrf.mxu0 }
  0x8b   :  { %v66_v17 = vsel %vm64_vm1, %v53_v16, %v61_v12 }
  0x8c   :  { %157 = vmatmul.msk.f32.vlgmr.msra.gmra.mxu3 %vm79_vm2, %v66_v17 }
 0x101   :  { %v103_v19 = vpop.f32.mrf.mxu1 }
 0x102   :  { %v104_v20 = vadd.f32 %v170_v18, %v103_v19 }
 0x104   :  { %v109_v21 = vmax.f32 %v104_v20, 0.0 }
 0x106   :  { %111 = vst.msk [vmem:[%s273_s5] sm:$0xff] %vm64_vm1, %v109_v21 }
 0x10f   :  { %v106_v22 = vpop.f32.mrf.mxu3 }
 0x110   :  { %v107_v23 = vadd.f32 %v170_v18, %v106_v22 }
 0x112   :  { %v110_v24 = vmax.f32 %v107_v23, 0.0 }
 0x114   :  { %112 = vst.msk [vmem:[%s273_s5 + $0x8] sm:$0xff] %vm64_vm1, %v110_v24  ;;  %158 = vmatpush.xpose.msk.msra.mxu2 %vm64_vm1, %v110_v24 }
 0x118   :  { %159 = vmatpush.xpose.msk.msra.mxu2 %vm64_vm1, %v109_v21 }
 0x11b   :  { %160 = vmatmul.msk.f32.vlgmr.msra.gmra.mxu2 %vm64_vm1, %v113_v25 }
 0x19e   :  { %v140_v26 = vpop.f32.mrf.mxu2 }
 0x19f   :  { %171 = vtanh.f32 %v140_v26 }
 0x1a5   :  { %v172_v27 = vpop.eup %171 }
 0x1a6   :  { %145 = vst.msk [vmem:[%s275_s6] sm:$0x1] %vm144_vm3, %v172_v27 }

// kernel: topk_classifier_forward.6
= control target key start
LH: loop header
LB: loop body
LE: loop exit
PB: predicated region body
PF: predicated region fallthrough
CT: control target
= control target key end

     0   :  { %vm24_vm0 = vcmask 64512   ;;  %s138_s27 = smov 32   ;;  %vm52_vm1 = vcmask 261120   ;;  %vm66_vm2 = vcmask 523264   ;;  %vm120_vm3 = vcmask 57344   ;;  %s216_s1 = inlined_call_operand.vmem [shape: f32[8,32], index: 1, kind: input, shape index: {}]   ;;  %s217_s0 = inlined_call_operand.vmem [shape: f32[8,8], index: 0, kind: input, shape index: {}]   ;;  %s218_s2 = inlined_call_operand.vmem [shape: f32[64,32], index: 2, kind: input, shape index: {}]   ;;  %s219_s3 = inlined_call_operand.vmem [shape: f32[1,32], index: 3, kind: input, shape index: {}]   ;;  %s220_s5 = inlined_call_operand.vmem [shape: f32[8,32], index: 5, kind: output, shape index: {0}]   ;;  %s221_s4 = inlined_call_operand.vmem [shape: f32[1,32], index: 4, kind: input, shape index: {}]   ;;  %s222_s6 = inlined_call_operand.vmem [shape: f32[1,8], index: 6, kind: output, shape index: {1}]  }
   0x1   :  { %v22_v0 = vld [vmem:[%s216_s1] sm:$0xff]  ;;  %v61_v2 = vld [vmem:[%s218_s2 + $0x38] sm:$0xff]  ;;  %v60_v3 = vld [vmem:[%s218_s2 + $0x30] sm:$0xff] }
   0x2   :  { %v23_v1 = vld [vmem:[%s217_s0] sm:$0xff]  ;;  %43 = vmatpush.msra.mxu0 %v22_v0  ;;  %49 = vrot.lane.b32.xlu0 %v22_v0, %s138_s27  ;;  %v59_v4 = vld [vmem:[%s218_s2 + $0x28] sm:$0xff]  ;;  %v57_v6 = vld [vmem:[%s218_s2 + $0x18] sm:$0xff] }
   0x3   :  { %130 = vmatmul.msk.f32.vlgmr.msra.gmra.mxu0 %vm24_vm0, %v23_v1  ;;  %78 = vmatpush.msra.mxu1 %v61_v2  ;;  %v58_v5 = vld [vmem:[%s218_s2 + $0x20] sm:$0xff]  ;;  %v56_v7 = vld [vmem:[%s218_s2 + $0x10] sm:$0xff]  ;;  %v55_v8 = vld [vmem:[%s218_s2 + $0x8] sm:$0xff] }
   0x4   :  { %v54_v9 = vld [vmem:[%s218_s2] sm:$0xff] }
   0x5   :  { %79 = vmatpush.msra.mxu1 %v60_v3  ;;  %v135_v13 = vld [vmem:[%s219_s3] ss:$0 sm:$0xff] }
   0x6   :  { %v92_v17 = vld [vmem:[%s221_s4] sm:$0x1] }
   0x7   :  { %80 = vmatpush.msra.mxu1 %v59_v4 }
   0x9   :  { %81 = vmatpush.msra.mxu1 %v58_v5 }
   0xb   :  { %82 = vmatpush.msra.mxu1 %v57_v6 }
   0xd   :  { %83 = vmatpush.msra.mxu1 %v56_v7 }
   0xf   :  { %84 = vmatpush.msra.mxu1 %v55_v8 }
  0x11   :  { %85 = vmatpush.msra.mxu1 %v54_v9 }
  0x74   :  { %v50_v10 = vpop.permute.xlu0 %49 }
  0x80   :  { %v45_v11 = vpop.f32.mrf.mxu0 }
  0x81   :  { %v53_v12 = vsel %vm52_vm1, %v45_v11, %v50_v10 }
  0x82   :  { %131 = vmatmul.msk.f32.vlgmr.msra.gmra.mxu1 %vm66_vm2, %v53_v12 }
  0xff   :  { %v87_v14 = vpop.f32.mrf.mxu1 }
 0x100   :  { %v88_v15 = vadd.f32 %v135_v13, %v87_v14 }
 0x102   :  { %v90_v16 = vmax.f32 %v88_v15, 0.0 }
 0x104   :  { %91 = vst.msk [vmem:[%s220_s5] sm:$0xff] %vm52_vm1, %v90_v16  ;;  %132 = vmatpush.xpose.msk.msra.mxu2 %vm52_vm1, %v90_v16 }
 0x107   :  { %133 = vmatmul.msk.f32.vlgmr.msra.gmra.mxu2 %vm52_vm1, %v92_v17 }
 0x18a   :  { %v116_v18 = vpop.f32.mrf.mxu2 }
 0x18b   :  { %136 = vtanh.f32 %v116_v18 }
 0x191   :  { %v137_v19 = vpop.eup %136 }
 0x192   :  { %121 = vst.msk [vmem:[%s222_s6] sm:$0x1] %vm120_vm3, %v137_v19 }

// kernel: topk_classifier_forward.7
= control target key start
LH: loop header
LB: loop body
LE: loop exit
PB: predicated region body
PF: predicated region fallthrough
CT: control target
= control target key end

     0   :  { %vm35_vm0 = vcmask 261120   ;;  %v349_v6 = vmov 8.0   ;;  %vm75_vm1 = vcmask 257024   ;;  %v350_v10 = vmov 4.0   ;;  %s518_s0 = inlined_call_operand.vmem [shape: f32[2,8,32], index: 0, kind: input, shape index: {}]   ;;  %s519_s1 = inlined_call_operand.vmem [shape: f32[2,4,32], index: 1, kind: input, shape index: {}]   ;;  %s520_s2 = inlined_call_operand.vmem [shape: f32[2,2,32], index: 2, kind: input, shape index: {}]   ;;  %s521_s3 = inlined_call_operand.vmem [shape: f32[64,32], index: 3, kind: input, shape index: {}]   ;;  %s522_s4 = inlined_call_operand.vmem [shape: f32[1,32], index: 4, kind: input, shape index: {}]   ;;  %s523_s5 = inlined_call_operand.vmem [shape: f32[32,16], index: 5, kind: input, shape index: {}]   ;;  %s524_s6 = inlined_call_operand.vmem [shape: f32[1,16], index: 6, kind: input, shape index: {}]   ;;  %s525_s7 = inlined_call_operand.vmem [shape: f32[16,4], index: 7, kind: input, shape index: {}]   ;;  %s526_s8 = inlined_call_operand.vmem [shape: f32[1,4], index: 8, kind: input, shape index: {}]   ;;  %s527_s9 = inlined_call_operand.hbm [shape: f32[2,4], index: 9, kind: output, shape index: {}]  }
   0x1   :  { %v168_v0 = vld [vmem:[%s521_s3 + $0x38] sm:$0xff]  ;;  %v167_v2 = vld [vmem:[%s521_s3 + $0x30] sm:$0xff]  ;;  %v166_v4 = vld [vmem:[%s521_s3 + $0x28] sm:$0xff]  ;;  %317 = vrcp.f32 %v349_v6  ;;  %vm119_vm2 = vcmask 254976   ;;  %v351_v28 = vmov 2.0  }
   0x2   :  { %v164_v1 = vld [vmem:[%s521_s3 + $0x18] sm:$0xff]  ;;  %187 = vmatpush.msra.mxu0 %v168_v0  ;;  %v163_v3 = vld [vmem:[%s521_s3 + $0x10] sm:$0xff]  ;;  %v162_v5 = vld [vmem:[%s521_s3 + $0x8] sm:$0xff]  ;;  %319 = vrcp.f32 %v350_v10 }
   0x3   :  { %212 = vmatpush.msra.mxu1 %v164_v1  ;;  %v165_v7 = vld [vmem:[%s521_s3 + $0x20] sm:$0xff]  ;;  %v435_v11 = vld [vmem:[%s518_s0 + $0x8] sm:$0xff]  ;;  %321 = vrcp.f32 %v351_v28 }
   0x4   :  { %v161_v8 = vld [vmem:[%s521_s3] sm:$0xff]  ;;  %188 = vmatpush.msra.mxu0 %v167_v2  ;;  %v57_v16 = vsel %vm35_vm0, %v435_v11, 0.0 }
   0x5   :  { %v430_v9 = vld [vmem:[%s518_s0] sm:$0xff]  ;;  %213 = vmatpush.msra.mxu1 %v163_v3  ;;  %v58_v20 = vrot.slane %v57_v16, 4 }
   0x6   :  { %v50_v12 = vsel %vm35_vm0, %v430_v9, 0.0  ;;  %v442_v13 = vld [vmem:[%s519_s1] sm:$0xf]  ;;  %v447_v14 = vld [vmem:[%s519_s1 + $0x4] sm:$0xf]  ;;  %189 = vmatpush.msra.mxu0 %v166_v4 }
   0x7   :  { %v51_v15 = vrot.slane %v50_v12, 4  ;;  %v92_v17 = vsel %vm75_vm1, %v442_v13, 0.0  ;;  %v99_v18 = vsel %vm75_vm1, %v447_v14, 0.0  ;;  %v458_v19 = vld [vmem:[%s520_s2] sm:$0x3]  ;;  %214 = vmatpush.msra.mxu1 %v162_v5  ;;  %v318_v29 = vpop.eup %317  ;;  %v59_v30 = vadd.f32 %v58_v20, %v57_v16 }
   0x8   :  { %v93_v21 = vrot.slane %v92_v17, 4  ;;  %v100_v22 = vrot.slane %v99_v18, 4  ;;  %v463_v23 = vld [vmem:[%s520_s2 + $0x2] sm:$0x3]  ;;  %v136_v24 = vsel %vm119_vm2, %v458_v19, 0.0  ;;  %190 = vmatpush.msra.mxu0 %v165_v7  ;;  %v320_v34 = vpop.eup %319  ;;  %v65_v36 = vmul.f32 8.0, %v318_v29 }
   0x9   :  { %v52_v25 = vadd.f32 %v51_v15, %v50_v12  ;;  %v137_v26 = vrot.slane %v136_v24, 4  ;;  %v143_v27 = vsel %vm119_vm2, %v463_v23, 0.0  ;;  %215 = vmatpush.msra.mxu1 %v161_v8  ;;  %vm69_vm3 = vweird.f32 %v318_v29 }
   0xa   :  { %v94_v31 = vadd.f32 %v93_v21, %v92_v17  ;;  %v101_v32 = vadd.f32 %v100_v22, %v99_v18  ;;  %v144_v33 = vrot.slane %v143_v27, 4 }
   0xb   :  { %v53_v35 = vrot.slane %v52_v25, 2  ;;  %v138_v37 = vadd.f32 %v137_v26, %v136_v24 }
   0xc   :  { %14 = vsyncpa [#allocation3], 0  ;;  %v60_v38 = vrot.slane %v59_v30, 2  ;;  %v95_v39 = vrot.slane %v94_v31, 2  ;;  %v102_v40 = vrot.slane %v101_v32, 2  ;;  %v107_v41 = vmul.f32 4.0, %v320_v34  ;;  %v322_v49 = vpop.eup %321 }
   0xd   :  { %v54_v42 = vadd.f32 %v53_v35, %v52_v25  ;;  %v66_v43 = vsub.f32 1.0, %v65_v36  ;;  %vm111_vm4 = vweird.f32 %v320_v34  ;;  %v139_v44 = vrot.slane %v138_v37, 2  ;;  %s352_s28 = smov [#allocation2]  }
   0xe   :  { %v61_v45 = vadd.f32 %v60_v38, %v59_v30  ;;  %v96_v46 = vadd.f32 %v95_v39, %v94_v31  ;;  %v103_v47 = vadd.f32 %v102_v40, %v101_v32  ;;  %v108_v48 = vsub.f32 1.0, %v107_v41  ;;  %s295_s29 = sshll.u32 %s352_s28, 4  ;;  %s296_s29 = int_to_ptr.vmem [resolvable:$true] %s295_s29 }
   0xf   :  { %v55_v50 = vrot.slane %v54_v42, 1  ;;  %v67_v51 = vmul.f32 %v318_v29, %v66_v43  ;;  %v140_v52 = vadd.f32 %v139_v44, %v138_v37  ;;  %v145_v53 = vadd.f32 %v144_v33, %v143_v27 }
  0x10   :  { %v62_v54 = vrot.slane %v61_v45, 1  ;;  %v97_v55 = vrot.slane %v96_v46, 1  ;;  %v104_v56 = vrot.slane %v103_v47, 1  ;;  %v109_v57 = vmul.f32 %v320_v34, %v108_v48 }
  0x11   :  { %v56_v58 = vadd.f32 %v55_v50, %v54_v42  ;;  %v68_v59 = vadd.f32 %v318_v29, %v67_v51  ;;  %v141_v60 = vrot.slane %v140_v52, 1  ;;  %v146_v61 = vrot.slane %v145_v53, 2 }
  0x12   :  { %v63_v62 = vadd.f32 %v62_v54, %v61_v45  ;;  %v98_v63 = vadd.f32 %v97_v55, %v96_v46  ;;  %v105_v0 = vadd.f32 %v104_v56, %v103_v47  ;;  %v110_v1 = vadd.f32 %v320_v34, %v109_v57 }
  0x13   :  { %v70_v2 = vsel %vm69_vm3, %v318_v29, %v68_v59  ;;  %v147_v3 = vadd.f32 %v146_v61, %v145_v53  ;;  %v151_v4 = vmul.f32 2.0, %v322_v49  ;;  %v36_v5 = vsel %vm35_vm0, %v430_v9, -inf }
  0x14   :  { %v71_v6 = vmul.f32 %v70_v2, %v56_v58  ;;  %v72_v7 = vmul.f32 %v70_v2, %v63_v62  ;;  %v112_v8 = vsel %vm111_vm4, %v320_v34, %v110_v1  ;;  %v142_v10 = vadd.f32 %v141_v60, %v140_v52 }
  0x15   :  { %v113_v12 = vmul.f32 %v112_v8, %v98_v63  ;;  %v114_v15 = vmul.f32 %v112_v8, %v105_v0  ;;  %v148_v16 = vrot.slane %v147_v3, 1  ;;  %v152_v17 = vsub.f32 1.0, %v151_v4  ;;  %v228_v8 = vld [vmem:[%s523_s5 + $0x10] sm:$0xff] }
  0x16   :  { %v37_v18 = vrot.slane %v36_v5, 4  ;;  %v43_v20 = vsel %vm35_vm0, %v435_v11, -inf  ;;  %v76_v21 = vsel %vm75_vm1, %v442_v13, -inf  ;;  %v83_v22 = vsel %vm75_vm1, %v447_v14, -inf }
  0x17   :  { %v115_v9 = vadd.f32 %v113_v12, %v71_v6  ;;  %v149_v24 = vadd.f32 %v148_v16, %v147_v3  ;;  %v153_v25 = vmul.f32 %v322_v49, %v152_v17  ;;  %vm155_vm5 = vweird.f32 %v322_v49  ;;  %v226_v12 = vld [vmem:[%s523_s5] sm:$0xff] }
  0x18   :  { %v38_v26 = vmax.f32 %v36_v5, %v37_v18  ;;  %v44_v27 = vrot.slane %v43_v20, 4  ;;  %v77_v28 = vrot.slane %v76_v21, 4  ;;  %v84_v29 = vrot.slane %v83_v22, 4  ;;  %v314_v16 = vld [vmem:[%s522_s4] ss:$0 sm:$0xff] }
  0x19   :  { %v116_v30 = vadd.f32 %v114_v15, %v72_v7  ;;  %v154_v31 = vadd.f32 %v322_v49, %v153_v25  ;;  %v120_v32 = vsel %vm119_vm2, %v458_v19, -inf  ;;  %v127_v11 = vsel %vm119_vm2, %v463_v23, -inf  ;;  %v229_v7 = vld [vmem:[%s523_s5 + $0x18] sm:$0xff] }
  0x1a   :  { %v39_v13 = vrot.slane %v38_v26, 2  ;;  %v45_v33 = vmax.f32 %v43_v20, %v44_v27  ;;  %v78_v34 = vmax.f32 %v76_v21, %v77_v28  ;;  %v85_v14 = vmax.f32 %v83_v22, %v84_v29  ;;  %249 = vmatpush.msra.mxu2 %v229_v7  ;;  %v259_v22 = vld [vmem:[%s525_s7 + $0x8] sm:$0xff]  ;;  %v316_v28 = vld [vmem:[%s526_s8] ss:$0 sm:$0xff] }
  0x1b   :  { %v156_v35 = vsel %vm155_vm5, %v322_v49, %v154_v31  ;;  %vm171_vm6 = vcmask 1041409   ;;  %v121_v36 = vrot.slane %v120_v32, 4  ;;  %v128_v37 = vrot.slane %v127_v11, 4  ;;  %282 = vmatpush.msra.mxu3 %v259_v22 }
  0x1c   :  { %v157_v38 = vmul.f32 %v156_v35, %v142_v10  ;;  %v158_v39 = vmul.f32 %v156_v35, %v149_v24  ;;  %v40_v40 = vmax.f32 %v38_v26, %v39_v13  ;;  %v46_v41 = vrot.slane %v45_v33, 2  ;;  %250 = vmatpush.msra.mxu2 %v228_v8  ;;  %v227_v10 = vld [vmem:[%s523_s5 + $0x8] sm:$0xff]  ;;  %v315_v24 = vld [vmem:[%s524_s6] ss:$0 sm:$0xff] }
  0x1d   :  { %v79_v42 = vrot.slane %v78_v34, 2  ;;  %v86_v43 = vrot.slane %v85_v14, 2  ;;  %v122_v44 = vmax.f32 %v120_v32, %v121_v36  ;;  %v129_v45 = vmax.f32 %v127_v11, %v128_v37 }
  0x1e   :  { %v159_v19 = vadd.f32 %v157_v38, %v115_v9  ;;  %v160_v46 = vadd.f32 %v158_v39, %v116_v30  ;;  %v41_v47 = vrot.slane %v40_v40, 1  ;;  %v47_v23 = vmax.f32 %v45_v33, %v46_v41  ;;  %251 = vmatpush.msra.mxu2 %v227_v10  ;;  %v258_v9 = vld [vmem:[%s525_s7] sm:$0xff]  ;;  %s297_s7 = sshll.u32 %s527_s9, 4  ;;  %s298_s7 = int_to_ptr.hbm [resolvable:$true] %s297_s7 }
  0x1f   :  { %v80_v48 = vmax.f32 %v78_v34, %v79_v42  ;;  %v87_v50 = vmax.f32 %v85_v14, %v86_v43  ;;  %v123_v51 = vrot.slane %v122_v44, 2  ;;  %v130_v52 = vrot.slane %v129_v45, 2  ;;  %283 = vmatpush.msra.mxu3 %v258_v9 }
  0x20   :  { %v172_v49 = vsel %vm171_vm6, %v160_v46, %v159_v19  ;;  %v42_v53 = vmax.f32 %v40_v40, %v41_v47  ;;  %v48_v54 = vrot.slane %v47_v23, 1  ;;  %252 = vmatpush.msra.mxu2 %v226_v12  ;;  %vm264_vm7 = vcmask 130048  }
  0x21   :  { %306 = vmatmul.msk.f32.vlgmr.msra.gmra.mxu0 %vm35_vm0, %v172_v49  ;;  %v81_v55 = vrot.slane %v80_v48, 1  ;;  %v88_v56 = vrot.slane %v87_v50, 1  ;;  %v124_v57 = vmax.f32 %v122_v44, %v123_v51  ;;  %v131_v58 = vmax.f32 %v129_v45, %v130_v52 }
  0x22   :  { %v49_v59 = vmax.f32 %v47_v23, %v48_v54  ;;  %vm288_vm8 = vcmask 25600  }
  0x23   :  { %v82_v60 = vmax.f32 %v80_v48, %v81_v55  ;;  %v89_v61 = vmax.f32 %v87_v50, %v88_v56  ;;  %v125_v62 = vrot.slane %v124_v57, 1  ;;  %v132_v63 = vrot.slane %v131_v58, 1 }
  0x25   :  { %v90_v0 = vadd.f32 %v82_v60, %v42_v53  ;;  %v91_v1 = vadd.f32 %v89_v61, %v49_v59  ;;  %v126_v2 = vmax.f32 %v124_v57, %v125_v62  ;;  %v133_v3 = vmax.f32 %v131_v58, %v132_v63 }
  0x27   :  { %v134_v4 = vadd.f32 %v126_v2, %v90_v0  ;;  %v135_v5 = vadd.f32 %v133_v3, %v91_v1 }
  0x29   :  { %v197_v6 = vsel %vm171_vm6, %v135_v5, %v134_v4 }
  0x2a   :  { %307 = vmatmul.msk.f32.vlgmr.msra.gmra.mxu1 %vm35_vm0, %v197_v6 }
  0x9e   :  { %v192_v15 = vpop.f32.mrf.mxu0 }
  0xa7   :  { %v217_v17 = vpop.f32.mrf.mxu1 }
  0xa8   :  { %v218_v18 = vadd.f32 %v217_v17, %v192_v15 }
  0xaa   :  { %v224_v20 = vadd.f32 %v314_v16, %v218_v18 }
  0xac   :  { %v225_v21 = vmax.f32 %v224_v20, 0.0 }
  0xae   :  { %308 = vmatmul.msk.f32.vlgmr.msra.gmra.mxu2 %vm35_vm0, %v225_v21 }
 0x131   :  { %v254_v25 = vpop.f32.mrf.mxu2 }
 0x132   :  { %v255_v26 = vadd.f32 %v315_v24, %v254_v25 }
 0x134   :  { %v257_v27 = vmax.f32 %v255_v26, 0.0 }
 0x136   :  { %309 = vmatmul.msk.f32.vlgmr.msra.gmra.mxu3 %vm264_vm7, %v257_v27 }
 0x1b9   :  { %v285_v29 = vpop.f32.mrf.mxu3 }
 0x1ba   :  { %v286_v30 = vadd.f32 %v316_v28, %v285_v29 }
 0x1bc   :  { %289 = vst.msk [vmem:[#allocation2] sm:$0x3] %vm288_vm8, %v286_v30 }
 0x1bd   :  { %300 = dma.vmem_to_hbm [thread:$0]  %s296_s29, 32, %s298_s7, [#allocation3]  }
 0x1be   :  { %347 = dma.done.wait [#allocation3], 32  }
 0x1bf   :  { %348 = vsyncadd [#allocation3], 4294967264 }
 0x1c0   :  { %305 = vsyncpa [#allocation3], 1 }

</bundles_post_ra>
